<compile_context>
chip_gen: v7x
topology: tpu7x:2x2x1
jax: 0.10.0
libtpu: 0.0.40
codegen_flags: <defaults>
</compile_context>

<pallas_src>
import math
from functools import partial

import jax
import jax.numpy as jnp
from jax.experimental import pallas as pl
from jax.experimental.pallas import tpu as pltpu


# Packed-parameter slab column offsets (128-aligned blocks).
_OFF_W0, _OFF_W1, _OFF_W2, _OFF_W4, _OFF_B, _OFF_MASK = 0, 128, 256, 384, 512, 640


# ----------------------------------------------------------------------------
# Fused forward kernel: all 5 layers in one invocation, VMEM resident.
# Activation layout: (C, B*H*W) — channels on sublanes, flattened spatial on
# lanes, so every matmul output is lane-dense.
# ----------------------------------------------------------------------------
def _divanet_fused_kernel(xs_ref, ps_ref, sel_ref, o_ref, stk_ref, *, H, W, M0):
    f32 = jnp.float32

    def silu(v):
        return v * jax.nn.sigmoid(v)          # sigmoid on EUP, mul on VPU

    # Static slices out of the single packed parameter slab (one input DMA).
    w0 = ps_ref[0:8,  _OFF_W0:_OFF_W0 + 36]   # layer-0 packed taps (8, 9*4)
    w1 = ps_ref[0:16, _OFF_W1:_OFF_W1 + 72]   # layer-1 packed taps (16, 9*8)
    w2 = ps_ref[0:16, _OFF_W2:_OFF_W2 + 16]   # layer-2 1x1        (16, 16)
    w4 = ps_ref[0:16, _OFF_W4:_OFF_W4 + 32]   # layer-4 1x1 over [y2; y1]
    b0 = ps_ref[0:8,  _OFF_B + 0:_OFF_B + 1]
    b1 = ps_ref[0:16, _OFF_B + 1:_OFF_B + 2]
    b2 = ps_ref[0:16, _OFF_B + 2:_OFF_B + 3]
    b4 = ps_ref[0:16, _OFF_B + 3:_OFF_B + 4]

    # ---- layer 0: Conv(4 -> 8, k=3, s=1) + BN + SiLU ---------------------
    # Input arrives pre-im2col'd as (36, M0); one K=36 matmul.
    y0 = silu(jnp.dot(w0, xs_ref[...], preferred_element_type=f32) + b0)   # (8, M0)

    # ---- layer 1: Conv(8 -> 16, k=3, s=2) + BN + SiLU --------------------
    # Stack the 9 shifted+masked copies of y0 along sublanes (rows t*8..t*8+7,
    # tile-aligned stores) into VMEM scratch, then ONE K=72 matmul.
    # Shift = lane roll (XLU); border wrap neutralized by host-built 0/1 masks.
    for t in range(9):
        dh, dw = t // 3 - 1, t % 3 - 1
        off = dh * W + dw                      # flat shift: y0[:, m + off]
        if off == 0:
            ys = y0
        else:
            ys = pltpu.roll(y0, (-off) % M0, axis=1)
            ys = ys * ps_ref[t:t + 1, _OFF_MASK:_OFF_MASK + M0]   # (1, M0) mask
        stk_ref[t * 8:(t + 1) * 8, :] = ys
    y1_full = jnp.dot(w1, stk_ref[...], preferred_element_type=f32)        # (16, M0)
    # Stride-2 output == stride-1 output sampled at even (h, w): one matmul
    # against the host-built 0/1 selection matrix (no strided gather).
    y1 = silu(jnp.dot(y1_full, sel_ref[...], preferred_element_type=f32) + b1)  # (16, M1)

    # ---- layer 2: Conv(16 -> 16, 1x1) + BN + SiLU ------------------------
    y2 = silu(jnp.dot(w2, y1, preferred_element_type=f32) + b2)            # (16, M1)

    # ---- layers 3 + 4: Concat([-1, 1]) then Conv(32 -> 16, 1x1) ----------
    # Concat is a sublane stack of two aligned 16-row tiles; the 1x1 conv is
    # a single matmul against the un-split w4 (one MXU push/pop).
    ycat = jnp.concatenate([y2, y1], axis=0)                               # (32, M1)
    o_ref[...] = silu(jnp.dot(w4, ycat, preferred_element_type=f32) + b4)  # (16, M1)


def _im2col_3x3(x_nchw):
    """NCHW -> (9*C, B*H*W) patch slab, rows = tap*C + c (zero-padded borders)."""
    B, C, H, W = x_nchw.shape
    xp = jnp.pad(x_nchw, ((0, 0), (0, 0), (1, 1), (1, 1)))
    taps = [xp[:, :, di:di + H, dj:dj + W] for di in range(3) for dj in range(3)]
    xs = jnp.stack(taps, axis=0)                          # (9, B, C, H, W)
    return jnp.transpose(xs, (0, 2, 1, 3, 4)).reshape(9 * C, B * H * W)


@jax.jit
def divanet_forward_pallas(x_nchw, fp):
    """Fused Pallas forward. x_nchw: (B, 4, H, W) -> (B, 16, H//2, W//2)."""
    B, C_in, H, W = x_nchw.shape
    Ho, Wo = H // 2, W // 2
    M0, M1 = B * H * W, B * Ho * Wo
    C_out = 16

    # Host-side layout plumbing only: layer-0 patches, lane-dense (36, M0).
    xs = _im2col_3x3(x_nchw.astype(jnp.float32))

    flops = 2 * (8 * 36 * M0 + 16 * 72 * M0 + 16 * M0 * M1
                 + 16 * 16 * M1 + 16 * 32 * M1)
    transcendentals = 8 * M0 + 3 * 16 * M1
    bytes_accessed = 4 * (xs.size + fp["ps"].size + fp["sel"].size + C_out * M1)

    out = pl.pallas_call(
        partial(_divanet_fused_kernel, H=H, W=W, M0=M0),
        out_shape=jax.ShapeDtypeStruct((C_out, M1), jnp.float32),
        scratch_shapes=[pltpu.VMEM((72, M0), jnp.float32)],
        cost_estimate=pl.CostEstimate(flops=flops,
                                      transcendentals=transcendentals,
                                      bytes_accessed=bytes_accessed),
    )(xs, fp["ps"], fp["sel"])

    # (C, B*Ho*Wo) -> NCHW
    return jnp.transpose(out.reshape(C_out, B, Ho, Wo), (1, 0, 2, 3))


# ----------------------------------------------------------------------------
# Parameter construction (Conv2d + BatchNorm2d folded into W, b)
# ----------------------------------------------------------------------------
def make_divisible(x, divisor=8):
    return math.ceil(x / divisor) * divisor


def make_conv_params(key, c1, c2, k, s):
    k_w, k_g, k_b = jax.random.split(key, 3)
    w = jax.random.normal(k_w, (c2, c1, k, k), jnp.float32) * 0.1     # OIHW
    gamma = 1.0 + 0.1 * jax.random.normal(k_g, (c2,), jnp.float32)
    beta = 0.1 * jax.random.normal(k_b, (c2,), jnp.float32)
    mean = jnp.zeros((c2,), jnp.float32)       # fresh BN running stats
    var = jnp.ones((c2,), jnp.float32)
    eps = 1e-5
    scale = gamma / jnp.sqrt(var + eps)
    return {"w_oihw": w * scale[:, None, None, None],
            "b": beta - mean * scale, "k": k, "s": s}


def conv_bn_silu_ref(p, x_nchw):
    """Pure-XLA reference Conv+BN(folded)+SiLU, NCHW."""
    pad = p["k"] // 2
    y = jax.lax.conv_general_dilated(
        x_nchw, p["w_oihw"], window_strides=(p["s"], p["s"]),
        padding=[(pad, pad), (pad, pad)],
        dimension_numbers=("NCHW", "OIHW", "NCHW"),
        precision=jax.lax.Precision.HIGHEST)
    y = y + p["b"][None, :, None, None]
    return y * jax.nn.sigmoid(y)


def build_divanet(key, input_channels=4):
    """Mirror of _parse_step for the concrete config (returns ref layers)."""
    width, max_channels = 0.5, 1024
    backbone = [
        [-1, 1, "Conv", [16, 3, 1]],
        [-1, 1, "Conv", [32, 3, 2]],
        [-1, 1, "Conv", [32, 1, 1]],
        [[-1, 1], 1, "Concat", [1]],
        [-1, 1, "Conv", [32, 1, 1]],
    ]
    ch = [input_channels]
    layers, save, conv_params = [], [], []
    keys = jax.random.split(key, len(backbone))
    for i, (f, n, m, args) in enumerate(backbone):
        if m == "Conv":
            c1 = ch[f]
            c2 = make_divisible(min(args[0], max_channels) * width, 8)
            p = make_conv_params(keys[i], c1, c2, args[1], args[2])
            conv_params.append(p)
            fn = partial(conv_bn_silu_ref, p)
        elif m == "Concat":
            c2 = sum(ch[x] for x in f)
            fn = lambda xs: jnp.concatenate(xs, axis=1)     # NCHW dim=1
        else:
            raise ValueError(m)
        layers.append({"i": i, "f": [f] if isinstance(f, int) else f, "fn": fn})
        save.extend(x for x in ([f] if isinstance(f, int) else f)
                    if x != -1 and x < i)
        if i == 0:
            ch = []
        ch.append(c2)
    return layers, sorted(save), conv_params


def pack_fused_params(conv_params, B, H, W):
    """Repack folded conv weights + masks into one slab, plus the sel matrix."""
    p0, p1, p2, p4 = conv_params          # conv layers 0, 1, 2, 4
    M0 = B * H * W
    Ho, Wo = H // 2, W // 2
    M1 = B * Ho * Wo

    def pack3x3(p):                        # (c2,c1,3,3) -> (c2, 9*c1), col = t*c1+cin
        c2, c1 = p["w_oihw"].shape[:2]
        return jnp.transpose(p["w_oihw"], (0, 2, 3, 1)).reshape(c2, 9 * c1)

    # Border-validity masks for the 9 taps of the in-kernel 3x3 (layer 1).
    pos = jnp.arange(M0)
    hh = (pos // W) % H
    ww = pos % W
    masks = []
    for t in range(9):
        dh, dw = t // 3 - 1, t % 3 - 1
        valid = (hh + dh >= 0) & (hh + dh < H) & (ww + dw >= 0) & (ww + dw < W)
        masks.append(valid.astype(jnp.float32))
    masks = jnp.stack(masks)                                   # (9, M0)

    # Stride-2 downsample: one-hot selection of even (h, w) stride-1 outputs.
    cols = jnp.arange(M1)
    src = ((cols // (Ho * Wo)) * (H * W)
           + 2 * ((cols // Wo) % Ho) * W
           + 2 * (cols % Wo))
    sel = (jnp.arange(M0)[:, None] == src[None, :]).astype(jnp.float32)   # (M0, M1)

    ps = jnp.zeros((16, _OFF_MASK + M0), jnp.float32)
    ps = ps.at[0:8,  _OFF_W0:_OFF_W0 + 36].set(pack3x3(p0))
    ps = ps.at[0:16, _OFF_W1:_OFF_W1 + 72].set(pack3x3(p1))
    ps = ps.at[0:16, _OFF_W2:_OFF_W2 + 16].set(p2["w_oihw"][:, :, 0, 0])
    ps = ps.at[0:16, _OFF_W4:_OFF_W4 + 32].set(p4["w_oihw"][:, :, 0, 0])
    ps = ps.at[0:8,  _OFF_B + 0].set(p0["b"])
    ps = ps.at[0:16, _OFF_B + 1].set(p1["b"])
    ps = ps.at[0:16, _OFF_B + 2].set(p2["b"])
    ps = ps.at[0:16, _OFF_B + 3].set(p4["b"])
    ps = ps.at[0:9,  _OFF_MASK:_OFF_MASK + M0].set(masks)
    return {"ps": ps, "sel": sel}


# ----------------------------------------------------------------------------
# Reference forward (exact replica of Divanet_model.forward routing semantics)
# ----------------------------------------------------------------------------
def divanet_reference_forward(x_nchw, layers, save_idx):
    out = {-1: x_nchw}
    for module in layers:
        save_i = [-1] + [i for i in [module["i"]] if i in save_idx]
        f = module["f"]
        _input = [out[k] for k in f] if len(f) > 1 else out[f[0]]
        _output = module["fn"](_input)
        out.update(dict.fromkeys(save_i, _output))
    return out[-1]


if __name__ == "__main__":
    key = jax.random.PRNGKey(0)
    k_params, k_x = jax.random.split(key)
    layers, save_idx, conv_params = build_divanet(k_params, input_channels=4)

    B, H, W = 2, 16, 16
    x = jax.random.normal(k_x, (B, 4, H, W), jnp.float32)          # NCHW input

    fused_params = pack_fused_params(conv_params, B, H, W)

    y = jax.block_until_ready(divanet_forward_pallas(x, fused_params))
    assert y.shape == (B, 16, H // 2, W // 2), y.shape
    assert bool(jnp.all(jnp.isfinite(y)))

    # Validate the fused kernel against the dict-routing XLA reference.
    y_ref = jax.block_until_ready(divanet_reference_forward(x, layers, save_idx))
    max_err = float(jnp.max(jnp.abs(y - y_ref)))
    assert max_err < 2e-2, f"fused kernel mismatch vs reference: {max_err}"

    print("KERNEL_OK")
</pallas_src>

<mosaic_0001>
module attributes {stable_mosaic.version = 11 : i64} {
  func.func @_divanet_fused_kernel(%arg0: memref<36x512xf32, #tpu.memory_space<vmem>>, %arg1: memref<16x1152xf32, #tpu.memory_space<vmem>>, %arg2: memref<512x128xf32, #tpu.memory_space<vmem>>, %arg3: memref<16x128xf32, #tpu.memory_space<vmem>>, %arg4: memref<72x512xf32, #tpu.memory_space<vmem>>) attributes {dimension_semantics = [], scalar_prefetch = 0 : i64, scratch_operands = 1 : i64, tpu.core_type = #tpu.core_type<tc>} {
    %c0 = arith.constant 0 : index
    %c0_0 = arith.constant 0 : index
    %0 = vector.load %arg1[%c0, %c0_0] : memref<16x1152xf32, #tpu.memory_space<vmem>>, vector<8x36xf32>
    %c0_1 = arith.constant 0 : index
    %c128 = arith.constant 128 : index
    %1 = vector.load %arg1[%c0_1, %c128] : memref<16x1152xf32, #tpu.memory_space<vmem>>, vector<16x72xf32>
    %c0_2 = arith.constant 0 : index
    %c256 = arith.constant 256 : index
    %2 = vector.load %arg1[%c0_2, %c256] : memref<16x1152xf32, #tpu.memory_space<vmem>>, vector<16x16xf32>
    %c0_3 = arith.constant 0 : index
    %c384 = arith.constant 384 : index
    %3 = vector.load %arg1[%c0_3, %c384] : memref<16x1152xf32, #tpu.memory_space<vmem>>, vector<16x32xf32>
    %c0_4 = arith.constant 0 : index
    %c512 = arith.constant 512 : index
    %4 = vector.load %arg1[%c0_4, %c512] : memref<16x1152xf32, #tpu.memory_space<vmem>>, vector<8x1xf32>
    %c0_5 = arith.constant 0 : index
    %c513 = arith.constant 513 : index
    %5 = vector.load %arg1[%c0_5, %c513] : memref<16x1152xf32, #tpu.memory_space<vmem>>, vector<16x1xf32>
    %c0_6 = arith.constant 0 : index
    %c514 = arith.constant 514 : index
    %6 = vector.load %arg1[%c0_6, %c514] : memref<16x1152xf32, #tpu.memory_space<vmem>>, vector<16x1xf32>
    %c0_7 = arith.constant 0 : index
    %c515 = arith.constant 515 : index
    %7 = vector.load %arg1[%c0_7, %c515] : memref<16x1152xf32, #tpu.memory_space<vmem>>, vector<16x1xf32>
    %c0_8 = arith.constant 0 : index
    %c0_9 = arith.constant 0 : index
    %8 = vector.load %arg0[%c0_8, %c0_9] : memref<36x512xf32, #tpu.memory_space<vmem>>, vector<36x512xf32>
    %cst = arith.constant dense<0.000000e+00> : vector<8x512xf32>
    %9 = tpu.matmul %0, %8, %cst {dimension_numbers = #tpu.dot_dimension_numbers<[1], [0], [0], [1], [0, 0, 1, 1], [], []>} : vector<8x36xf32>, vector<36x512xf32>, vector<8x512xf32> -> vector<8x512xf32>
    %10 = vector.broadcast %4 : vector<8x1xf32> to vector<8x512xf32>
    %11 = arith.addf %9, %10 : vector<8x512xf32>
    %12 = arith.negf %11 : vector<8x512xf32>
    %13 = math.exp %12 : vector<8x512xf32>
    %cst_10 = arith.constant 1.000000e+00 : f32
    %14 = vector.broadcast %cst_10 : f32 to vector<8x512xf32>
    %15 = arith.addf %14, %13 : vector<8x512xf32>
    %16 = arith.divf %14, %15 : vector<8x512xf32>
    %17 = arith.mulf %11, %16 : vector<8x512xf32>
    %c17_i32 = arith.constant 17 : i32
    %18 = tpu.dynamic_rotate %17 by %c17_i32 dim 1 : vector<8x512xf32>, i32 -> vector<8x512xf32>
    %c0_11 = arith.constant 0 : index
    %c640 = arith.constant 640 : index
    %19 = vector.load %arg1[%c0_11, %c640] : memref<16x1152xf32, #tpu.memory_space<vmem>>, vector<1x512xf32>
    %20 = vector.broadcast %19 : vector<1x512xf32> to vector<8x512xf32>
    %21 = arith.mulf %18, %20 : vector<8x512xf32>
    %c0_12 = arith.constant 0 : index
    %c0_13 = arith.constant 0 : index
    %22 = vector.load %arg4[%c0_12, %c0_13] : memref<72x512xf32, #tpu.memory_space<vmem>>, vector<8x512xf32>
    tpu.vector_store %arg4[%c0_12, %c0_13], %21 {strides = array<i32>} : memref<72x512xf32, #tpu.memory_space<vmem>>, vector<8x512xf32>,
    %c16_i32 = arith.constant 16 : i32
    %23 = tpu.dynamic_rotate %17 by %c16_i32 dim 1 : vector<8x512xf32>, i32 -> vector<8x512xf32>
    %c1 = arith.constant 1 : index
    %c640_14 = arith.constant 640 : index
    %24 = vector.load %arg1[%c1, %c640_14] : memref<16x1152xf32, #tpu.memory_space<vmem>>, vector<1x512xf32>
    %25 = vector.broadcast %24 : vector<1x512xf32> to vector<8x512xf32>
    %26 = arith.mulf %23, %25 : vector<8x512xf32>
    %c8 = arith.constant 8 : index
    %c0_15 = arith.constant 0 : index
    %27 = vector.load %arg4[%c8, %c0_15] : memref<72x512xf32, #tpu.memory_space<vmem>>, vector<8x512xf32>
    tpu.vector_store %arg4[%c8, %c0_15], %26 {strides = array<i32>} : memref<72x512xf32, #tpu.memory_space<vmem>>, vector<8x512xf32>,
    %c15_i32 = arith.constant 15 : i32
    %28 = tpu.dynamic_rotate %17 by %c15_i32 dim 1 : vector<8x512xf32>, i32 -> vector<8x512xf32>
    %c2 = arith.constant 2 : index
    %c640_16 = arith.constant 640 : index
    %29 = vector.load %arg1[%c2, %c640_16] : memref<16x1152xf32, #tpu.memory_space<vmem>>, vector<1x512xf32>
    %30 = vector.broadcast %29 : vector<1x512xf32> to vector<8x512xf32>
    %31 = arith.mulf %28, %30 : vector<8x512xf32>
    %c16 = arith.constant 16 : index
    %c0_17 = arith.constant 0 : index
    %32 = vector.load %arg4[%c16, %c0_17] : memref<72x512xf32, #tpu.memory_space<vmem>>, vector<8x512xf32>
    tpu.vector_store %arg4[%c16, %c0_17], %31 {strides = array<i32>} : memref<72x512xf32, #tpu.memory_space<vmem>>, vector<8x512xf32>,
    %c1_i32 = arith.constant 1 : i32
    %33 = tpu.dynamic_rotate %17 by %c1_i32 dim 1 : vector<8x512xf32>, i32 -> vector<8x512xf32>
    %c3 = arith.constant 3 : index
    %c640_18 = arith.constant 640 : index
    %34 = vector.load %arg1[%c3, %c640_18] : memref<16x1152xf32, #tpu.memory_space<vmem>>, vector<1x512xf32>
    %35 = vector.broadcast %34 : vector<1x512xf32> to vector<8x512xf32>
    %36 = arith.mulf %33, %35 : vector<8x512xf32>
    %c24 = arith.constant 24 : index
    %c0_19 = arith.constant 0 : index
    %37 = vector.load %arg4[%c24, %c0_19] : memref<72x512xf32, #tpu.memory_space<vmem>>, vector<8x512xf32>
    tpu.vector_store %arg4[%c24, %c0_19], %36 {strides = array<i32>} : memref<72x512xf32, #tpu.memory_space<vmem>>, vector<8x512xf32>,
    %c32 = arith.constant 32 : index
    %c0_20 = arith.constant 0 : index
    %38 = vector.load %arg4[%c32, %c0_20] : memref<72x512xf32, #tpu.memory_space<vmem>>, vector<8x512xf32>
    tpu.vector_store %arg4[%c32, %c0_20], %17 {strides = array<i32>} : memref<72x512xf32, #tpu.memory_space<vmem>>, vector<8x512xf32>,
    %c511_i32 = arith.constant 511 : i32
    %39 = tpu.dynamic_rotate %17 by %c511_i32 dim 1 : vector<8x512xf32>, i32 -> vector<8x512xf32>
    %c5 = arith.constant 5 : index
    %c640_21 = arith.constant 640 : index
    %40 = vector.load %arg1[%c5, %c640_21] : memref<16x1152xf32, #tpu.memory_space<vmem>>, vector<1x512xf32>
    %41 = vector.broadcast %40 : vector<1x512xf32> to vector<8x512xf32>
    %42 = arith.mulf %39, %41 : vector<8x512xf32>
    %c40 = arith.constant 40 : index
    %c0_22 = arith.constant 0 : index
    %43 = vector.load %arg4[%c40, %c0_22] : memref<72x512xf32, #tpu.memory_space<vmem>>, vector<8x512xf32>
    tpu.vector_store %arg4[%c40, %c0_22], %42 {strides = array<i32>} : memref<72x512xf32, #tpu.memory_space<vmem>>, vector<8x512xf32>,
    %c497_i32 = arith.constant 497 : i32
    %44 = tpu.dynamic_rotate %17 by %c497_i32 dim 1 : vector<8x512xf32>, i32 -> vector<8x512xf32>
    %c6 = arith.constant 6 : index
    %c640_23 = arith.constant 640 : index
    %45 = vector.load %arg1[%c6, %c640_23] : memref<16x1152xf32, #tpu.memory_space<vmem>>, vector<1x512xf32>
    %46 = vector.broadcast %45 : vector<1x512xf32> to vector<8x512xf32>
    %47 = arith.mulf %44, %46 : vector<8x512xf32>
    %c48 = arith.constant 48 : index
    %c0_24 = arith.constant 0 : index
    %48 = vector.load %arg4[%c48, %c0_24] : memref<72x512xf32, #tpu.memory_space<vmem>>, vector<8x512xf32>
    tpu.vector_store %arg4[%c48, %c0_24], %47 {strides = array<i32>} : memref<72x512xf32, #tpu.memory_space<vmem>>, vector<8x512xf32>,
    %c496_i32 = arith.constant 496 : i32
    %49 = tpu.dynamic_rotate %17 by %c496_i32 dim 1 : vector<8x512xf32>, i32 -> vector<8x512xf32>
    %c7 = arith.constant 7 : index
    %c640_25 = arith.constant 640 : index
    %50 = vector.load %arg1[%c7, %c640_25] : memref<16x1152xf32, #tpu.memory_space<vmem>>, vector<1x512xf32>
    %51 = vector.broadcast %50 : vector<1x512xf32> to vector<8x512xf32>
    %52 = arith.mulf %49, %51 : vector<8x512xf32>
    %c56 = arith.constant 56 : index
    %c0_26 = arith.constant 0 : index
    %53 = vector.load %arg4[%c56, %c0_26] : memref<72x512xf32, #tpu.memory_space<vmem>>, vector<8x512xf32>
    tpu.vector_store %arg4[%c56, %c0_26], %52 {strides = array<i32>} : memref<72x512xf32, #tpu.memory_space<vmem>>, vector<8x512xf32>,
    %c495_i32 = arith.constant 495 : i32
    %54 = tpu.dynamic_rotate %17 by %c495_i32 dim 1 : vector<8x512xf32>, i32 -> vector<8x512xf32>
    %c8_27 = arith.constant 8 : index
    %c640_28 = arith.constant 640 : index
    %55 = vector.load %arg1[%c8_27, %c640_28] : memref<16x1152xf32, #tpu.memory_space<vmem>>, vector<1x512xf32>
    %56 = vector.broadcast %55 : vector<1x512xf32> to vector<8x512xf32>
    %57 = arith.mulf %54, %56 : vector<8x512xf32>
    %c64 = arith.constant 64 : index
    %c0_29 = arith.constant 0 : index
    %58 = vector.load %arg4[%c64, %c0_29] : memref<72x512xf32, #tpu.memory_space<vmem>>, vector<8x512xf32>
    tpu.vector_store %arg4[%c64, %c0_29], %57 {strides = array<i32>} : memref<72x512xf32, #tpu.memory_space<vmem>>, vector<8x512xf32>,
    %c0_30 = arith.constant 0 : index
    %c0_31 = arith.constant 0 : index
    %59 = vector.load %arg4[%c0_30, %c0_31] : memref<72x512xf32, #tpu.memory_space<vmem>>, vector<72x512xf32>
    %cst_32 = arith.constant dense<0.000000e+00> : vector<16x512xf32>
    %60 = tpu.matmul %1, %59, %cst_32 {dimension_numbers = #tpu.dot_dimension_numbers<[1], [0], [0], [1], [0, 0, 1, 1], [], []>} : vector<16x72xf32>, vector<72x512xf32>, vector<16x512xf32> -> vector<16x512xf32>
    %c0_33 = arith.constant 0 : index
    %c0_34 = arith.constant 0 : index
    %61 = vector.load %arg2[%c0_33, %c0_34] : memref<512x128xf32, #tpu.memory_space<vmem>>, vector<512x128xf32>
    %cst_35 = arith.constant dense<0.000000e+00> : vector<16x128xf32>
    %62 = tpu.matmul %60, %61, %cst_35 {dimension_numbers = #tpu.dot_dimension_numbers<[1], [0], [0], [1], [0, 0, 1, 1], [], []>} : vector<16x512xf32>, vector<512x128xf32>, vector<16x128xf32> -> vector<16x128xf32>
    %63 = vector.broadcast %5 : vector<16x1xf32> to vector<16x128xf32>
    %64 = arith.addf %62, %63 : vector<16x128xf32>
    %65 = arith.negf %64 : vector<16x128xf32>
    %66 = math.exp %65 : vector<16x128xf32>
    %cst_36 = arith.constant 1.000000e+00 : f32
    %67 = vector.broadcast %cst_36 : f32 to vector<16x128xf32>
    %68 = arith.addf %67, %66 : vector<16x128xf32>
    %69 = arith.divf %67, %68 : vector<16x128xf32>
    %70 = arith.mulf %64, %69 : vector<16x128xf32>
    %cst_37 = arith.constant dense<0.000000e+00> : vector<16x128xf32>
    %71 = tpu.matmul %2, %70, %cst_37 {dimension_numbers = #tpu.dot_dimension_numbers<[1], [0], [0], [1], [0, 0, 1, 1], [], []>} : vector<16x16xf32>, vector<16x128xf32>, vector<16x128xf32> -> vector<16x128xf32>
    %72 = vector.broadcast %6 : vector<16x1xf32> to vector<16x128xf32>
    %73 = arith.addf %71, %72 : vector<16x128xf32>
    %74 = arith.negf %73 : vector<16x128xf32>
    %75 = math.exp %74 : vector<16x128xf32>
    %cst_38 = arith.constant 1.000000e+00 : f32
    %76 = vector.broadcast %cst_38 : f32 to vector<16x128xf32>
    %77 = arith.addf %76, %75 : vector<16x128xf32>
    %78 = arith.divf %76, %77 : vector<16x128xf32>
    %79 = arith.mulf %73, %78 : vector<16x128xf32>
    %80 = tpu.concatenate %79, %70 in 0 : vector<16x128xf32>, vector<16x128xf32> -> vector<32x128xf32>
    %cst_39 = arith.constant dense<0.000000e+00> : vector<16x128xf32>
    %81 = tpu.matmul %3, %80, %cst_39 {dimension_numbers = #tpu.dot_dimension_numbers<[1], [0], [0], [1], [0, 0, 1, 1], [], []>} : vector<16x32xf32>, vector<32x128xf32>, vector<16x128xf32> -> vector<16x128xf32>
    %82 = vector.broadcast %7 : vector<16x1xf32> to vector<16x128xf32>
    %83 = arith.addf %81, %82 : vector<16x128xf32>
    %84 = arith.negf %83 : vector<16x128xf32>
    %85 = math.exp %84 : vector<16x128xf32>
    %cst_40 = arith.constant 1.000000e+00 : f32
    %86 = vector.broadcast %cst_40 : f32 to vector<16x128xf32>
    %87 = arith.addf %86, %85 : vector<16x128xf32>
    %88 = arith.divf %86, %87 : vector<16x128xf32>
    %89 = arith.mulf %83, %88 : vector<16x128xf32>
    %c0_41 = arith.constant 0 : index
    %c0_42 = arith.constant 0 : index
    %90 = vector.load %arg3[%c0_41, %c0_42] : memref<16x128xf32, #tpu.memory_space<vmem>>, vector<16x128xf32>
    tpu.vector_store %arg3[%c0_41, %c0_42], %89 {strides = array<i32>} : memref<16x128xf32, #tpu.memory_space<vmem>>, vector<16x128xf32>,
    return
  }
}

</mosaic_0001>

<bundles_post_ra>
// kernel: divanet_forward_pallas.1
= control target key start
LH: loop header
LB: loop body
LE: loop exit
PB: predicated region body
PF: predicated region fallthrough
CT: control target
= control target key end

     0   :  { %v1560_v3 = vmov 0.0   ;;  %v1561_v8 = vmov 0   ;;  %vm52_vm0 = vcmask 1043456   ;;  %vm48_vm1 = vcmask 293888   ;;  %s1563_s29 = smov 17   ;;  %s1564_s30 = smov 15   ;;  %s2167_s0 = inlined_call_operand.vmem [shape: f32[36,512], index: 0, kind: input, shape index: {}]   ;;  %s2168_s1 = inlined_call_operand.vmem [shape: f32[16,1152], index: 1, kind: input, shape index: {}]   ;;  %s2169_s2 = inlined_call_operand.vmem [shape: f32[512,128], index: 2, kind: input, shape index: {}]   ;;  %s2170_s3 = inlined_call_operand.vmem [shape: f32[16,128], index: 3, kind: output, shape index: {}]  }
   0x1   :  { %v24_v0 = vld [vmem:[%s2167_s0 + $0x8] sm:$0xff]  ;;  %v26_v2 = vld [vmem:[%s2167_s0 + $0x18] sm:$0xff]  ;;  %129 = vmatprep.mubr.f32.mxu0 %v1560_v3  ;;  %200 = vmatprep.mubr.f32.mxu1 %v1560_v3  ;;  %v23_v6 = vld [vmem:[%s2167_s0] sm:$0xff]  ;;  %s1565_s4 = smov 1   ;;  %s1566_s5 = smov 127   ;;  %vm629_vm10 = vcmask 588800  }
   0x2   :  { %v28_v1 = vld [vmem:[%s2167_s0 + $0x28] sm:$0xff]  ;;  %v30_v5 = vld [vmem:[%s2167_s0 + $0x38] sm:$0xff]  ;;  %v27_v7 = vld [vmem:[%s2167_s0 + $0x20] sm:$0xff]  ;;  %1514 = vset.pattern.permute.xlu0 %v1561_v8  ;;  %s1567_s6 = smov 113   ;;  %s1568_s7 = smov 112   ;;  %vm1035_vm11 = vcmask 130048  }
   0x3   :  { %v1377_v4 = vpack.c.bf16 %v28_v1, %v24_v0  ;;  %v1385_v9 = vpack.c.bf16 %v30_v5, %v26_v2  ;;  %v1379_v10 = vpack.c.bf16 %v27_v7, %v23_v6  ;;  %v25_v11 = vld [vmem:[%s2167_s0 + $0x10] sm:$0xff]  ;;  %v32_v13 = vld [vmem:[%s2167_s0 + $0x48] sm:$0xff]  ;;  %v34_v16 = vld [vmem:[%s2167_s0 + $0x58] sm:$0xff]  ;;  %s1569_s8 = smov 111   ;;  %v243_v6 = vlaneseq }
   0x4   :  { %v29_v12 = vld [vmem:[%s2167_s0 + $0x30] sm:$0xff]  ;;  %v36_v15 = vld [vmem:[%s2167_s0 + $0x68] sm:$0xff]  ;;  %v38_v17 = vld [vmem:[%s2167_s0 + $0x78] sm:$0xff]  ;;  %vm1139_vm12 = vcmask 261120  }
   0x5   :  { %1378 = vmatprep.subr.bf16.mxu0 %v1377_v4  ;;  %v1387_v14 = vpack.c.bf16 %v29_v12, %v25_v11  ;;  %1386 = vmatprep.subr.bf16.mxu1 %v1385_v9  ;;  %v1381_v18 = vpack.c.bf16 %v36_v15, %v32_v13  ;;  %v1389_v19 = vpack.c.bf16 %v38_v17, %v34_v16  ;;  %v31_v20 = vld [vmem:[%s2167_s0 + $0x40] sm:$0xff]  ;;  %v33_v22 = vld [vmem:[%s2167_s0 + $0x50] sm:$0xff]  ;;  %v40_v26 = vld [vmem:[%s2167_s0 + $0x88] sm:$0xf]  ;;  %v254_v9 = vshrl.u32 %v243_v6, 7 }
   0x6   :  { %1380 = vmatpush1.bf16.msra.mxu0 %v1379_v10  ;;  %v35_v21 = vld [vmem:[%s2167_s0 + $0x60] sm:$0xff]  ;;  %v37_v24 = vld [vmem:[%s2167_s0 + $0x70] sm:$0xff]  ;;  %v42_v27 = vld [vmem:[%s2167_s0 + $0x98] sm:$0xf]  ;;  %v1734_v12 = vand.u32 127, %v243_v6 }
   0x7   :  { %1388 = vmatpush1.bf16.msra.mxu1 %v1387_v14  ;;  %v1383_v23 = vpack.c.bf16 %v35_v21, %v31_v20  ;;  %1382 = vmatprep.subr.bf16.mxu0 %v1381_v18  ;;  %v1391_v25 = vpack.c.bf16 %v37_v24, %v33_v22  ;;  %v1652_v28 = vld [vmem:[%s2168_s1 + $0x20] sm:$0xff]  ;;  %v41_v30 = vld [vmem:[%s2167_s0 + $0x90] sm:$0xf]  ;;  %v1736_v13 = vsub.s32 1, %v254_v9  ;;  %v1748_v18 = vsub.s32 2, %v254_v9 }
   0x8   :  { %1390 = vmatprep.subr.bf16.mxu1 %v1389_v19  ;;  %45 = vperm.xlu0 %1514, %v1652_v28   ;;  %v39_v29 = vld [vmem:[%s2167_s0 + $0x80] sm:$0xf]  ;;  %s1562_s0 = smov 16   ;;  %v1750_v19 = vsub.s32 0, %v254_v9  ;;  %v1752_v20 = vsub.s32 3, %v254_v9  ;;  %vm245_vm2 = vcmp.lt.s32.totalorder %v1734_v12, 17 }
   0x9   :  { %v14_v31 = vld [vmem:[%s2168_s1] sm:$0xff]  ;;  %vm289_vm3 = vcmp.lt.s32.totalorder %v1734_v12, 16  ;;  %vm333_vm4 = vcmp.lt.s32.totalorder %v1734_v12, 15  ;;  %vm425_vm5 = vcmp.lt.s32.totalorder %v1734_v12, 127  ;;  %vm377_vm6 = vcmp.lt.s32.totalorder %v1734_v12, 1 }
   0xa   :  { %1384 = vmatpush1.bf16.msra.mxu0 %v1383_v23  ;;  %v1251_v14 = vld [vmem:[%s2168_s1 + $0x28] ss:$8 sm:$0xf]  ;;  %v1252_v15 = vld [vmem:[%s2168_s1 + $0x29] ss:$8 sm:$0xf] }
   0xb   :  { %1392 = vmatpush1.bf16.msra.mxu1 %v1391_v25  ;;  %1241 = vmatprep.subr.msk.mxu0 %vm52_vm0, %v40_v26  ;;  %v260_v21 = vrot.slane %v1251_v14, %v1736_v13  ;;  %v304_v22 = vrot.slane %v1252_v15, %v1736_v13  ;;  %v264_v23 = vrot.slane %v1251_v14, %v1748_v18  ;;  %v1805_v9 = vld [vmem:[%s2168_s1 + $0x2e] ss:$8 sm:$0xf]  ;;  %vm469_vm7 = vcmp.lt.s32.totalorder %v1734_v12, 113 }
   0xc   :  { %1244 = vmatprep.subr.msk.mxu1 %vm52_vm0, %v42_v27  ;;  %v308_v25 = vrot.slane %v1252_v15, %v1748_v18  ;;  %v256_v27 = vrot.slane %v1251_v14, %v1750_v19  ;;  %vm513_vm8 = vcmp.lt.s32.totalorder %v1734_v12, 112  ;;  %vm557_vm9 = vcmp.lt.s32.totalorder %v1734_v12, 111  ;;  %v15_v12 = vld [vmem:[%s2168_s1 + $0x8] sm:$0xff] }
   0xe   :  { %1242 = vmatpush1.msk.msra.mxu0 %vm52_vm0, %v39_v29  ;;  %v268_v29 = vrot.slane %v1251_v14, %v1752_v20 }
   0xf   :  { %1245 = vmatpush1.msk.msra.mxu1 %vm52_vm0, %v41_v30  ;;  %1243 = vmatmul.mubr.msk.f32.vlgmr.msra.gmra.mrb[0].mxu0 %vm48_vm1, %v14_v31 }
  0x10   :  { %1246 = vmatmul.mubr.msk.f32.vlgmr.msra.gmra.mrb[0].mxu1 %vm48_vm1, %v14_v31  ;;  %700 = vmatprep.mubr.f32.mxu0 %v1560_v3 }
  0x11   :  { %777 = vmatprep.mubr.f32.mxu1 %v1560_v3 }
  0x87   :  { %v46_v32 = vpop.permute.xlu0 %45 }
  0xe2   :  { %v131_v33 = vpop.f32.mrb[0].mxu0 }
  0xe3   :  { %v132_v34 = vadd.f32 %v131_v33, %v46_v32  ;;  %v202_v35 = vpop.f32.mrb[0].mxu1  ;;  %v133_v36 = vpop.f32.mrb[1].mxu0 }
  0xe4   :  { %v203_v37 = vadd.f32 %v202_v35, %v46_v32  ;;  %v204_v38 = vpop.f32.mrb[1].mxu1  ;;  %v134_v45 = vadd.f32 %v133_v36, %v46_v32  ;;  %v300_v36 = vrot.slane %v1252_v15, %v1750_v19 }
  0xe5   :  { %v1247_v39 = vmul.f32 -1.442695, %v132_v34  ;;  %v205_v47 = vadd.f32 %v204_v38, %v46_v32 }
  0xe6   :  { %v1249_v40 = vmul.f32 -1.442695, %v203_v37  ;;  %v1248_v46 = vmul.f32 -1.442695, %v134_v45 }
  0xe7   :  { %1520 = vpow2.f32 %v1247_v39  ;;  %v1250_v48 = vmul.f32 -1.442695, %v205_v47 }
  0xe8   :  { %1522 = vpow2.f32 %v1249_v40 }
  0xf1   :  { %v1521_v41 = vpop.eup %1520 }
  0xf2   :  { %v1523_v42 = vpop.eup %1522  ;;  %v219_v43 = vadd.f32 1.0, %v1521_v41 }
  0xf3   :  { %v221_v44 = vadd.f32 1.0, %v1523_v42 }
  0xf4   :  { %1524 = vrcp.f32 %v219_v43  ;;  %v1775_v43 = vld [vmem:[%s2168_s1 + $0x2a] ss:$8 sm:$0xf] }
  0xf5   :  { %1526 = vrcp.f32 %v221_v44 }
  0xf6   :  { %1528 = vpow2.f32 %v1248_v46 }
  0xf7   :  { %1530 = vpow2.f32 %v1250_v48 }
  0xfe   :  { %v1525_v49 = vpop.eup %1524 }
  0xff   :  { %v1666_v50 = vmul.f32 %v1525_v49, %v132_v34  ;;  %v1527_v51 = vpop.eup %1526 }
 0x100   :  { %v1672_v52 = vmul.f32 %v1527_v51, %v203_v37  ;;  %v1529_v53 = vpop.eup %1528  ;;  %v312_v37 = vrot.slane %v1252_v15, %v1752_v20 }
 0x101   :  { %281 = vrot.lane.b32.xlu1 %v1666_v50, %s1562_s0  ;;  %235 = vrot.lane.b32.xlu0 %v1666_v50, %s1563_s29  ;;  %v220_v54 = vadd.f32 1.0, %v1529_v53  ;;  %v1531_v55 = vpop.eup %1530 }
 0x102   :  { %v222_v56 = vadd.f32 1.0, %v1531_v55  ;;  %v344_v55 = vrot.slane %v1775_v43, %v1750_v19 }
 0x103   :  { %1532 = vrcp.f32 %v220_v54  ;;  %v1788_v54 = vld [vmem:[%s2168_s1 + $0x2d] ss:$8 sm:$0xf] }
 0x104   :  { %1534 = vrcp.f32 %v222_v56  ;;  %v356_v56 = vrot.slane %v1775_v43, %v1752_v20  ;;  %v436_v14 = vrot.slane %v1788_v54, %v1750_v19  ;;  %v440_v15 = vrot.slane %v1788_v54, %v1736_v13 }
 0x105   :  { %239 = vrot.lane.b32.xlu1 %v1672_v52, %s1563_s29  ;;  %285 = vrot.lane.b32.xlu0 %v1672_v52, %s1562_s0 }
 0x109   :  { %325 = vrot.lane.b32.xlu1 %v1666_v50, %s1564_s30  ;;  %373 = vrot.lane.b32.xlu0 %v1672_v52, %s1565_s4 }
 0x10d   :  { %369 = vrot.lane.b32.xlu1 %v1666_v50, %s1565_s4  ;;  %421 = vrot.lane.b32.xlu0 %v1672_v52, %s1566_s5  ;;  %v1533_v57 = vpop.eup %1532 }
 0x10e   :  { %v1690_v58 = vmul.f32 %v1533_v57, %v134_v45  ;;  %v1535_v59 = vpop.eup %1534  ;;  %v1254_v57 = vld [vmem:[%s2168_s1 + $0x2b] ss:$8 sm:$0xf] }
 0x10f   :  { %v1696_v60 = vmul.f32 %v1535_v59, %v205_v47 }
 0x111   :  { %329 = vrot.lane.b32.xlu1 %v1672_v52, %s1564_s30  ;;  %465 = vrot.lane.b32.xlu0 %v1672_v52, %s1567_s6 }
 0x115   :  { %417 = vrot.lane.b32.xlu1 %v1666_v50, %s1566_s5  ;;  %509 = vrot.lane.b32.xlu0 %v1672_v52, %s1568_s7 }
 0x119   :  { %461 = vrot.lane.b32.xlu1 %v1666_v50, %s1567_s6  ;;  %505 = vrot.lane.b32.xlu0 %v1666_v50, %s1568_s7 }
 0x11d   :  { %237 = vrot.lane.b32.xlu1 %v1690_v58, %s1563_s29  ;;  %283 = vrot.lane.b32.xlu0 %v1690_v58, %s1562_s0 }
 0x121   :  { %241 = vrot.lane.b32.xlu1 %v1696_v60, %s1563_s29  ;;  %287 = vrot.lane.b32.xlu0 %v1696_v60, %s1562_s0 }
 0x125   :  { %331 = vrot.lane.b32.xlu1 %v1696_v60, %s1564_s30  ;;  %327 = vrot.lane.b32.xlu0 %v1690_v58, %s1564_s30 }
 0x129   :  { %419 = vrot.lane.b32.xlu1 %v1690_v58, %s1566_s5  ;;  %371 = vrot.lane.b32.xlu0 %v1690_v58, %s1565_s4 }
 0x12d   :  { %463 = vrot.lane.b32.xlu1 %v1690_v58, %s1567_s6  ;;  %375 = vrot.lane.b32.xlu0 %v1696_v60, %s1565_s4 }
 0x131   :  { %507 = vrot.lane.b32.xlu1 %v1690_v58, %s1568_s7  ;;  %423 = vrot.lane.b32.xlu0 %v1696_v60, %s1566_s5 }
 0x135   :  { %467 = vrot.lane.b32.xlu1 %v1696_v60, %s1567_s6  ;;  %511 = vrot.lane.b32.xlu0 %v1696_v60, %s1568_s7 }
 0x139   :  { %551 = vrot.lane.b32.xlu1 %v1690_v58, %s1569_s8  ;;  %553 = vrot.lane.b32.xlu0 %v1672_v52, %s1569_s8 }
 0x13d   :  { %549 = vrot.lane.b32.xlu1 %v1666_v50, %s1569_s8  ;;  %555 = vrot.lane.b32.xlu0 %v1696_v60, %s1569_s8 }
 0x173   :  { %v282_v61 = vpop.permute.xlu1 %281  ;;  %v236_v62 = vpop.permute.xlu0 %235 }
 0x177   :  { %v240_v63 = vpop.permute.xlu1 %239  ;;  %v286_v0 = vpop.permute.xlu0 %285 }
 0x17b   :  { %v1718_v1 = vpop.permute.xlu1 %325  ;;  %v1720_v2 = vpop.permute.xlu0 %373 }
 0x17f   :  { %v1722_v4 = vpop.permute.xlu1 %369  ;;  %v1724_v5 = vpop.permute.xlu0 %421 }
 0x183   :  { %v1726_v7 = vpop.permute.xlu1 %329  ;;  %v1728_v8 = vpop.permute.xlu0 %465 }
 0x187   :  { %v1730_v10 = vpop.permute.xlu1 %417  ;;  %v1732_v11 = vpop.permute.xlu0 %509 }
 0x18b   :  { %v1744_v16 = vpop.permute.xlu1 %461  ;;  %v1746_v17 = vpop.permute.xlu0 %505 }
 0x18f   :  { %v238_v24 = vpop.permute.xlu1 %237  ;;  %v284_v26 = vpop.permute.xlu0 %283 }
 0x190   :  { %v247_v30 = vsel %vm245_vm2, %v238_v24, %v240_v63  ;;  %v248_v31 = vsel %vm245_vm2, %v236_v62, %v238_v24  ;;  %v291_v32 = vsel %vm289_vm3, %v284_v26, %v286_v0  ;;  %v292_v33 = vsel %vm289_vm3, %v282_v61, %v284_v26 }
 0x191   :  { %v274_v34 = vmul.f32 %v260_v21, %v248_v31  ;;  %v318_v35 = vmul.f32 %v304_v22, %v292_v33  ;;  %v275_v38 = vmul.f32 %v264_v23, %v247_v30  ;;  %v319_v39 = vmul.f32 %v308_v25, %v291_v32  ;;  %v1816_v21 = vld [vmem:[%s2168_s1 + $0x2f] ss:$8 sm:$0xf] }
 0x192   :  { %v392_v23 = vrot.slane %v1254_v57, %v1736_v13  ;;  %v396_v24 = vrot.slane %v1254_v57, %v1748_v18  ;;  %v480_v26 = vrot.slane %v1805_v9, %v1750_v19  ;;  %v400_v32 = vrot.slane %v1254_v57, %v1752_v20 }
 0x193   :  { %v242_v40 = vpop.permute.xlu1 %241  ;;  %v288_v41 = vpop.permute.xlu0 %287  ;;  %v1393_v42 = vpack.c.bf16 %v318_v35, %v274_v34  ;;  %v1411_v22 = vpack.c.bf16 %v319_v39, %v275_v38  ;;  %v524_v33 = vrot.slane %v1816_v21, %v1750_v19  ;;  %v528_v34 = vrot.slane %v1816_v21, %v1736_v13 }
 0x194   :  { %v246_v44 = vsel %vm245_vm2, %v240_v63, %v242_v40  ;;  %v249_v45 = vsel %vm245_vm2, %v242_v40, %v236_v62  ;;  %v290_v46 = vsel %vm289_vm3, %v286_v0, %v288_v41  ;;  %v293_v47 = vsel %vm289_vm3, %v288_v41, %v282_v61 }
 0x195   :  { %v273_v48 = vmul.f32 %v256_v27, %v249_v45  ;;  %v276_v49 = vmul.f32 %v268_v29, %v246_v44  ;;  %v317_v51 = vmul.f32 %v300_v36, %v293_v47  ;;  %v320_v53 = vmul.f32 %v312_v37, %v290_v46  ;;  %1394 = vmatprep.subr.bf16.mxu0 %v1393_v42 }
 0x196   :  { %v348_v62 = vrot.slane %v1775_v43, %v1736_v13  ;;  %v352_v63 = vrot.slane %v1775_v43, %v1748_v18  ;;  %v484_v27 = vrot.slane %v1805_v9, %v1736_v13  ;;  %v388_v29 = vrot.slane %v1254_v57, %v1750_v19 }
 0x197   :  { %v1395_v59 = vpack.c.bf16 %v317_v51, %v273_v48  ;;  %v332_v61 = vpop.permute.xlu1 %331  ;;  %v328_v0 = vpop.permute.xlu0 %327  ;;  %v1409_v6 = vpack.c.bf16 %v320_v53, %v276_v49  ;;  %v444_v38 = vrot.slane %v1788_v54, %v1748_v18  ;;  %v448_v42 = vrot.slane %v1788_v54, %v1752_v20 }
 0x198   :  { %v336_v25 = vsel %vm333_vm4, %v1718_v1, %v328_v0  ;;  %v335_v39 = vsel %vm333_vm4, %v328_v0, %v1726_v7  ;;  %v334_v43 = vsel %vm333_vm4, %v1726_v7, %v332_v61  ;;  %v337_v44 = vsel %vm333_vm4, %v332_v61, %v1718_v1 }
 0x199   :  { %1396 = vmatpush1.bf16.msra.mxu0 %v1395_v59  ;;  %1410 = vmatprep.subr.bf16.mxu1 %v1409_v6  ;;  %v362_v40 = vmul.f32 %v348_v62, %v336_v25  ;;  %v488_v46 = vrot.slane %v1805_v9, %v1748_v18  ;;  %v492_v54 = vrot.slane %v1805_v9, %v1752_v20 }
 0x19a   :  { %1412 = vmatpush1.bf16.msra.mxu1 %v1411_v22  ;;  %v363_v7 = vmul.f32 %v352_v63, %v335_v39  ;;  %v532_v59 = vrot.slane %v1816_v21, %v1748_v18  ;;  %v361_v61 = vmul.f32 %v344_v55, %v337_v44  ;;  %v364_v62 = vmul.f32 %v356_v56, %v334_v43 }
 0x19b   :  { %v420_v30 = vpop.permute.xlu1 %419  ;;  %v372_v31 = vpop.permute.xlu0 %371 }
 0x19c   :  { %v427_v35 = vsel %vm425_vm5, %v420_v30, %v1724_v5  ;;  %v379_v36 = vsel %vm377_vm6, %v372_v31, %v1720_v2  ;;  %v380_v37 = vsel %vm377_vm6, %v1722_v4, %v372_v31  ;;  %v428_v47 = vsel %vm425_vm5, %v1730_v10, %v420_v30 }
 0x19d   :  { %v406_v41 = vmul.f32 %v392_v23, %v380_v37  ;;  %v407_v45 = vmul.f32 %v396_v24, %v379_v36  ;;  %v454_v48 = vmul.f32 %v440_v15, %v427_v35  ;;  %v453_v15 = vmul.f32 %v436_v14, %v428_v47  ;;  %v1884_v14 = vld [vmem:[%s2168_s1 + $0x70] ss:$8 sm:$0xf] }
 0x19e   :  { %v572_v39 = vrot.slane %v1884_v14, %v1736_v13  ;;  %v568_v47 = vrot.slane %v1884_v14, %v1750_v19  ;;  %v807_v19 = vld [vmem:[%s2169_s2 + $0x88] sm:$0xff] }
 0x19f   :  { %v464_v49 = vpop.permute.xlu1 %463  ;;  %v376_v51 = vpop.permute.xlu0 %375  ;;  %v1397_v53 = vpack.c.bf16 %v406_v41, %v362_v40  ;;  %v1415_v22 = vpack.c.bf16 %v407_v45, %v363_v7  ;;  %v1401_v24 = vpack.c.bf16 %v454_v48, %v1690_v58  ;;  %v1403_v36 = vpack.c.bf16 %v453_v15, %v1666_v50  ;;  %v823_v15 = vld [vmem:[%s2169_s2 + $0x108] sm:$0xff] }
 0x1a0   :  { %v378_v1 = vsel %vm377_vm6, %v1720_v2, %v376_v51  ;;  %v381_v57 = vsel %vm377_vm6, %v376_v51, %v1722_v4  ;;  %v471_v63 = vsel %vm469_vm7, %v464_v49, %v1728_v8  ;;  %v536_v2 = vrot.slane %v1816_v21, %v1752_v20 }
 0x1a1   :  { %v405_v0 = vmul.f32 %v388_v29, %v381_v57  ;;  %v408_v6 = vmul.f32 %v400_v32, %v378_v1  ;;  %1398 = vmatprep.subr.bf16.mxu0 %v1397_v53  ;;  %v472_v4 = vsel %vm469_vm7, %v1744_v16, %v464_v49  ;;  %v498_v30 = vmul.f32 %v484_v27, %v471_v63  ;;  %v806_v53 = vld [vmem:[%s2169_s2 + $0x80] sm:$0xff]  ;;  %v791_v1 = vld [vmem:[%s2169_s2 + $0x8] sm:$0xff]  ;;  %v808_v63 = vld [vmem:[%s2169_s2 + $0x90] sm:$0xff] }
 0x1a2   :  { %v497_v37 = vmul.f32 %v480_v26, %v472_v4  ;;  %v580_v48 = vrot.slane %v1884_v14, %v1752_v20  ;;  %v838_v57 = vld [vmem:[%s2169_s2 + $0x180] sm:$0xff]  ;;  %v16_v4 = vld [vmem:[%s2168_s1 + $0x50] sm:$0xff] }
 0x1a3   :  { %v1399_v9 = vpack.c.bf16 %v405_v0, %v361_v61  ;;  %v508_v23 = vpop.permute.xlu1 %507  ;;  %v424_v55 = vpop.permute.xlu0 %423  ;;  %v1413_v56 = vpack.c.bf16 %v408_v6, %v364_v62  ;;  %v822_v6 = vld [vmem:[%s2169_s2 + $0x100] sm:$0xff] }
 0x1a4   :  { %v515_v25 = vsel %vm513_vm8, %v508_v23, %v1732_v11  ;;  %v516_v21 = vsel %vm513_vm8, %v1746_v17, %v508_v23  ;;  %v426_v29 = vsel %vm425_vm5, %v1724_v5, %v424_v55  ;;  %v429_v58 = vsel %vm425_vm5, %v424_v55, %v1730_v10  ;;  %v840_v55 = vld [vmem:[%s2169_s2 + $0x190] sm:$0xff] }
 0x1a5   :  { %v542_v31 = vmul.f32 %v528_v34, %v515_v25  ;;  %v455_v32 = vmul.f32 %v444_v38, %v426_v29  ;;  %v456_v35 = vmul.f32 %v448_v42, %v429_v58  ;;  %1400 = vmatpush1.bf16.msra.mxu0 %v1399_v9  ;;  %1414 = vmatprep.subr.bf16.mxu1 %v1413_v56  ;;  %v841_v56 = vld [vmem:[%s2169_s2 + $0x198] sm:$0xff] }
 0x1a6   :  { %1402 = vmatprep.subr.bf16.mxu0 %v1401_v24  ;;  %v541_v5 = vmul.f32 %v524_v33, %v516_v21  ;;  %1416 = vmatpush1.bf16.msra.mxu1 %v1415_v22  ;;  %v1425_v22 = vpack.c.bf16 %v807_v19, %v806_v53  ;;  %v1459_v24 = vpack.c.bf16 %v823_v15, %v822_v6  ;;  %v793_v25 = vld [vmem:[%s2169_s2 + $0x18] sm:$0xff]  ;;  %v824_v21 = vld [vmem:[%s2169_s2 + $0x110] sm:$0xff]  ;;  %v830_v53 = vld [vmem:[%s2169_s2 + $0x140] sm:$0xff] }
 0x1a7   :  { %v1419_v40 = vpack.c.bf16 %v455_v32, %v1672_v52  ;;  %v468_v10 = vpop.permute.xlu1 %467  ;;  %v512_v27 = vpop.permute.xlu0 %511  ;;  %v1417_v34 = vpack.c.bf16 %v456_v35, %v1696_v60  ;;  %v1405_v38 = vpack.c.bf16 %v542_v31, %v498_v30  ;;  %v825_v58 = vld [vmem:[%s2169_s2 + $0x118] sm:$0xff]  ;;  %v810_v30 = vld [vmem:[%s2169_s2 + $0xa0] sm:$0xff]  ;;  %v811_v31 = vld [vmem:[%s2169_s2 + $0xa8] sm:$0xff]  ;;  %v1461_v32 = vpack.c.bf16 %v841_v56, %v840_v55 }
 0x1a8   :  { %v470_v50 = vsel %vm469_vm7, %v1728_v8, %v468_v10  ;;  %v473_v26 = vsel %vm469_vm7, %v468_v10, %v1744_v16  ;;  %v514_v13 = vsel %vm513_vm8, %v1732_v11, %v512_v27  ;;  %v517_v52 = vsel %vm513_vm8, %v512_v27, %v1746_v17  ;;  %v842_v35 = vld [vmem:[%s2169_s2 + $0x1a0] sm:$0xff]  ;;  %v833_v15 = vld [vmem:[%s2169_s2 + $0x158] sm:$0xff] }
 0x1a9   :  { %v499_v33 = vmul.f32 %v488_v46, %v470_v50  ;;  %v500_v41 = vmul.f32 %v492_v54, %v473_v26  ;;  %v543_v60 = vmul.f32 %v532_v59, %v514_v13  ;;  %v544_v42 = vmul.f32 %v536_v2, %v517_v52  ;;  %1404 = vmatpush1.bf16.msra.mxu0 %v1403_v36  ;;  %v790_v54 = vld [vmem:[%s2169_s2] sm:$0xff]  ;;  %v839_v59 = vld [vmem:[%s2169_s2 + $0x188] sm:$0xff]  ;;  %v809_v2 = vld [vmem:[%s2169_s2 + $0x98] sm:$0xff] }
 0x1aa   :  { %1418 = vmatprep.subr.bf16.mxu1 %v1417_v34  ;;  %1406 = vmatprep.subr.bf16.mxu0 %v1405_v38  ;;  %v1407_v8 = vpack.c.bf16 %v541_v5, %v497_v37  ;;  %v576_v46 = vrot.slane %v1884_v14, %v1748_v18  ;;  %v1427_v9 = vpack.c.bf16 %v791_v1, %v790_v54  ;;  %v792_v14 = vld [vmem:[%s2169_s2 + $0x10] sm:$0xff]  ;;  %v843_v36 = vld [vmem:[%s2169_s2 + $0x1a8] sm:$0xff]  ;;  %v826_v10 = vld [vmem:[%s2169_s2 + $0x120] sm:$0xff] }
 0x1ab   :  { %v1423_v43 = vpack.c.bf16 %v543_v60, %v499_v33  ;;  %1420 = vmatpush1.bf16.msra.mxu1 %v1419_v40  ;;  %v552_v44 = vpop.permute.xlu1 %551  ;;  %v554_v16 = vpop.permute.xlu0 %553  ;;  %v1421_v45 = vpack.c.bf16 %v544_v42, %v500_v41  ;;  %v1457_v23 = vpack.c.bf16 %v839_v59, %v838_v57  ;;  %v1429_v29 = vpack.c.bf16 %v809_v2, %v808_v63  ;;  %v795_v40 = vld [vmem:[%s2169_s2 + $0x28] sm:$0xff]  ;;  %v812_v38 = vld [vmem:[%s2169_s2 + $0xb0] sm:$0xff]  ;;  %v813_v50 = vld [vmem:[%s2169_s2 + $0xb8] sm:$0xff] }
 0x1ac   :  { %v559_v11 = vsel %vm557_vm9, %v552_v44, %v554_v16  ;;  %v1431_v37 = vpack.c.bf16 %v793_v25, %v792_v14  ;;  %v1433_v5 = vpack.c.bf16 %v811_v31, %v810_v30  ;;  %v1465_v27 = vpack.c.bf16 %v843_v36, %v842_v35  ;;  %v827_v34 = vld [vmem:[%s2169_s2 + $0x128] sm:$0xff]  ;;  %v844_v26 = vld [vmem:[%s2169_s2 + $0x1b0] sm:$0xff]  ;;  %v845_v13 = vld [vmem:[%s2169_s2 + $0x1b8] sm:$0xff] }
 0x1ad   :  { %v586_v17 = vmul.f32 %v572_v39, %v559_v11  ;;  %1408 = vmatpush1.bf16.msra.mxu0 %v1407_v8  ;;  %1422 = vmatprep.subr.bf16.mxu1 %v1421_v45  ;;  %v1463_v39 = vpack.c.bf16 %v825_v58, %v824_v21  ;;  %v1467_v33 = vpack.c.bf16 %v827_v34, %v826_v10  ;;  %v796_v60 = vld [vmem:[%s2169_s2 + $0x30] sm:$0xff]  ;;  %v797_v42 = vld [vmem:[%s2169_s2 + $0x38] sm:$0xff]  ;;  %v815_v45 = vld [vmem:[%s2169_s2 + $0xc8] sm:$0xff] }
 0x1ae   :  { %v1437_v41 = vpack.c.bf16 %v813_v50, %v812_v38  ;;  %v828_v8 = vld [vmem:[%s2169_s2 + $0x130] sm:$0xff]  ;;  %v846_v11 = vld [vmem:[%s2169_s2 + $0x1c0] sm:$0xff]  ;;  %v831_v54 = vld [vmem:[%s2169_s2 + $0x148] sm:$0xff]  ;;  %v1570_v38 = vmov 1  }
 0x1af   :  { %1424 = vmatpush1.bf16.msra.mxu1 %v1423_v43  ;;  %v550_v49 = vpop.permute.xlu1 %549  ;;  %652 = vmatprep.subr.mxu0 %v586_v17  ;;  %v556_v51 = vpop.permute.xlu0 %555  ;;  %v1469_v43 = vpack.c.bf16 %v845_v13, %v844_v26  ;;  %v1439_v17 = vpack.c.bf16 %v797_v42, %v796_v60  ;;  %v849_v1 = vld [vmem:[%s2169_s2 + $0x1d8] sm:$0xff]  ;;  %v1475_v59 = vpack.c.bf16 %v831_v54, %v830_v53  ;;  %v819_v63 = vld [vmem:[%s2169_s2 + $0xe8] sm:$0xff]  ;;  %v850_v2 = vld [vmem:[%s2169_s2 + $0x1e0] sm:$0xff] }
 0x1b0   :  { %v560_v18 = vsel %vm557_vm9, %v550_v49, %v552_v44  ;;  %v558_v20 = vsel %vm557_vm9, %v554_v16, %v556_v51  ;;  %v561_v7 = vsel %vm557_vm9, %v556_v51, %v550_v49  ;;  %v829_v44 = vld [vmem:[%s2169_s2 + $0x138] sm:$0xff]  ;;  %v814_v16 = vld [vmem:[%s2169_s2 + $0xc0] sm:$0xff]  ;;  %v799_v51 = vld [vmem:[%s2169_s2 + $0x48] sm:$0xff]  ;;  %1515 = vset.pattern.permute.xlu1 %v1570_v38  ;;  %1516 = vset.pattern.permute.xlu0 %v1570_v38 }
 0x1b1   :  { %v585_v61 = vmul.f32 %v568_v47, %v560_v18  ;;  %v587_v62 = vmul.f32 %v576_v46, %v558_v20  ;;  %v588_v0 = vmul.f32 %v580_v48, %v561_v7  ;;  %v847_v47 = vld [vmem:[%s2169_s2 + $0x1c8] sm:$0xff]  ;;  %v1471_v46 = vpack.c.bf16 %v829_v44, %v828_v8  ;;  %v798_v49 = vld [vmem:[%s2169_s2 + $0x40] sm:$0xff]  ;;  %v816_v18 = vld [vmem:[%s2169_s2 + $0xd0] sm:$0xff]  ;;  %855 = vperm.xlu1 %1515, %v1652_v28  }
 0x1b2   :  { %v1441_v48 = vpack.c.bf16 %v815_v45, %v814_v16  ;;  %v1473_v19 = vpack.c.bf16 %v847_v47, %v846_v11  ;;  %v817_v20 = vld [vmem:[%s2169_s2 + $0xd8] sm:$0xff]  ;;  %v848_v7 = vld [vmem:[%s2169_s2 + $0x1d0] sm:$0xff]  ;;  %v1443_v57 = vpack.c.bf16 %v799_v51, %v798_v49  ;;  %v802_v56 = vld [vmem:[%s2169_s2 + $0x60] sm:$0xff] }
 0x1b3   :  { %653 = vmatpush1.msra.mxu0 %v585_v61  ;;  %729 = vmatprep.subr.mxu1 %v588_v0  ;;  %v1445_v61 = vpack.c.bf16 %v817_v20, %v816_v18  ;;  %v801_v0 = vld [vmem:[%s2169_s2 + $0x58] sm:$0xff]  ;;  %v1477_v6 = vpack.c.bf16 %v849_v1, %v848_v7  ;;  %v834_v14 = vld [vmem:[%s2169_s2 + $0x160] sm:$0xff]  ;;  %v835_v21 = vld [vmem:[%s2169_s2 + $0x168] sm:$0xff] }
 0x1b4   :  { %1259 = vmatmul.mubr.msk.f32.vlgmr.msra.gmra.mrb[2].mxu0 %vm629_vm10, %v15_v12  ;;  %730 = vmatpush1.msra.mxu1 %v587_v62  ;;  %v800_v62 = vld [vmem:[%s2169_s2 + $0x50] sm:$0xff]  ;;  %v821_v58 = vld [vmem:[%s2169_s2 + $0xf8] sm:$0xff]  ;;  %v1483_v31 = vpack.c.bf16 %v835_v21, %v834_v14  ;;  %v2137_v34 = vld [vmem:[%s2168_s1 + $0x68] sm:$0xff] }
 0x1b5   :  { %1261 = vmatmul.mubr.msk.f32.vlgmr.msra.gmra.mrb[2].mxu1 %vm629_vm10, %v15_v12  ;;  %706 = vmatprep.mubr.f32.mxu0 %v1560_v3  ;;  %v832_v12 = vld [vmem:[%s2169_s2 + $0x150] sm:$0xff]  ;;  %v805_v36 = vld [vmem:[%s2169_s2 + $0x78] sm:$0xff] }
 0x1b6   :  { %783 = vmatprep.mubr.f32.mxu1 %v1560_v3  ;;  %1426 = vmatprep.subr.bf16.mxu0 %v1425_v22  ;;  %v794_v3 = vld [vmem:[%s2169_s2 + $0x20] sm:$0xff]  ;;  %v804_v35 = vld [vmem:[%s2169_s2 + $0x70] sm:$0xff] }
 0x1b7   :  { %1428 = vmatpush3.bf16.msra.mxu0 %v1427_v9  ;;  %1458 = vmatprep.subr.bf16.mxu1 %v1457_v23  ;;  %v1435_v52 = vpack.c.bf16 %v795_v40, %v794_v3  ;;  %v818_v22 = vld [vmem:[%s2169_s2 + $0xe0] sm:$0xff]  ;;  %v1447_v9 = vpack.c.bf16 %v801_v0, %v800_v62  ;;  %v1479_v23 = vpack.c.bf16 %v833_v15, %v832_v12  ;;  %v836_v3 = vld [vmem:[%s2169_s2 + $0x170] sm:$0xff]  ;;  %v837_v40 = vld [vmem:[%s2169_s2 + $0x178] sm:$0xff] }
 0x1b8   :  { %1260 = vmatmul.mubr.msk.f32.gmra.mrb[4].mxu0 %vm629_vm10, %v16_v4  ;;  %1460 = vmatpush3.bf16.msra.mxu1 %v1459_v24  ;;  %v1449_v55 = vpack.c.bf16 %v819_v63, %v818_v22  ;;  %v803_v24 = vld [vmem:[%s2169_s2 + $0x68] sm:$0xff]  ;;  %v17_v8 = vld [vmem:[%s2168_s1 + $0x10] sm:$0xff] }
 0x1b9   :  { %1262 = vmatmul.mubr.msk.f32.gmra.mrb[4].mxu1 %vm629_vm10, %v16_v4  ;;  %1430 = vmatprep.subr.bf16.mxu0 %v1429_v29  ;;  %v851_v4 = vld [vmem:[%s2169_s2 + $0x1e8] sm:$0xff]  ;;  %v820_v29 = vld [vmem:[%s2169_s2 + $0xf0] sm:$0xff]  ;;  %v1451_v30 = vpack.c.bf16 %v803_v24, %v802_v56 }
 0x1ba   :  { %1462 = vmatprep.subr.bf16.mxu1 %v1461_v32  ;;  %v1481_v25 = vpack.c.bf16 %v851_v4, %v850_v2  ;;  %v1453_v32 = vpack.c.bf16 %v821_v58, %v820_v29  ;;  %860 = vperm.xlu0 %1516, %v2137_v34  }
 0x1bb   :  { %1432 = vmatpush3.bf16.msra.mxu0 %v1431_v37  ;;  %v852_v37 = vld [vmem:[%s2169_s2 + $0x1f0] sm:$0xff] }
 0x1bc   :  { %1464 = vmatpush3.bf16.msra.mxu1 %v1463_v39  ;;  %1434 = vmatprep.subr.bf16.mxu0 %v1433_v5  ;;  %v1455_v39 = vpack.c.bf16 %v805_v36, %v804_v35  ;;  %v853_v5 = vld [vmem:[%s2169_s2 + $0x1f8] sm:$0xff] }
 0x1bd   :  { %1466 = vmatprep.subr.bf16.mxu1 %v1465_v27  ;;  %v1485_v10 = vpack.c.bf16 %v853_v5, %v852_v37  ;;  %v1487_v27 = vpack.c.bf16 %v837_v40, %v836_v3  ;;  %v20_v40 = vld [vmem:[%s2168_s1 + $0x60] sm:$0xff] }
 0x1bf   :  { %1436 = vmatpush3.bf16.msra.mxu0 %v1435_v52 }
 0x1c0   :  { %1468 = vmatpush3.bf16.msra.mxu1 %v1467_v33  ;;  %1438 = vmatprep.subr.bf16.mxu0 %v1437_v41 }
 0x1c1   :  { %1470 = vmatprep.subr.bf16.mxu1 %v1469_v43  ;;  %v1571_v43 = vmov 2  }
 0x1c2   :  { %1517 = vset.pattern.permute.xlu1 %v1571_v43 }
 0x1c3   :  { %1440 = vmatpush3.bf16.msra.mxu0 %v1439_v17  ;;  %1028 = vperm.xlu1 %1517, %v1652_v28  }
 0x1c4   :  { %1472 = vmatpush3.bf16.msra.mxu1 %v1471_v46  ;;  %1442 = vmatprep.subr.bf16.mxu0 %v1441_v48 }
 0x1c5   :  { %1474 = vmatprep.subr.bf16.mxu1 %v1473_v19 }
 0x1c7   :  { %1444 = vmatpush3.bf16.msra.mxu0 %v1443_v57  ;;  %1032 = vperm.xlu1 %1517, %v2137_v34  }
 0x1c8   :  { %1476 = vmatpush3.bf16.msra.mxu1 %v1475_v59  ;;  %1446 = vmatprep.subr.bf16.mxu0 %v1445_v61 }
 0x1c9   :  { %1478 = vmatprep.subr.bf16.mxu1 %v1477_v6 }
 0x1cb   :  { %1448 = vmatpush3.bf16.msra.mxu0 %v1447_v9  ;;  %v18_v9 = vld [vmem:[%s2168_s1 + $0x58] sm:$0xff] }
 0x1cc   :  { %1480 = vmatpush3.bf16.msra.mxu1 %v1479_v23  ;;  %1450 = vmatprep.subr.bf16.mxu0 %v1449_v55  ;;  %v19_v23 = vld [vmem:[%s2168_s1 + $0x18] sm:$0xff]  ;;  %v1572_v55 = vmov 3  }
 0x1cd   :  { %1482 = vmatprep.subr.bf16.mxu1 %v1481_v25  ;;  %1519 = vset.pattern.permute.xlu1 %v1572_v55 }
 0x1ce   :  { %1518 = vset.pattern.permute.xlu0 %v1572_v55  ;;  %1136 = vperm.xlu1 %1519, %v2137_v34  }
 0x1cf   :  { %1452 = vmatpush3.bf16.msra.mxu0 %v1451_v30  ;;  %1132 = vperm.xlu0 %1518, %v1652_v28  }
 0x1d0   :  { %1484 = vmatpush3.bf16.msra.mxu1 %v1483_v31  ;;  %1454 = vmatprep.subr.bf16.mxu0 %v1453_v32 }
 0x1d1   :  { %1486 = vmatprep.subr.bf16.mxu1 %v1485_v10 }
 0x1d3   :  { %1456 = vmatpush3.bf16.msra.mxu0 %v1455_v39 }
 0x1d4   :  { %1488 = vmatpush3.bf16.msra.mxu1 %v1487_v27 }
 0x230   :  { %v856_v16 = vpop.permute.xlu1 %855 }
 0x239   :  { %v861_v51 = vpop.permute.xlu0 %860 }
 0x242   :  { %v1029_v56 = vpop.permute.xlu1 %1028 }
 0x246   :  { %v1033_v24 = vpop.permute.xlu1 %1032 }
 0x24d   :  { %v1137_v10 = vpop.permute.xlu1 %1136 }
 0x24e   :  { %v1133_v27 = vpop.permute.xlu0 %1132 }
 0x287   :  { %v702_v50 = vpop.f32.mrb[2].mxu0 }
 0x288   :  { %v704_v26 = vpop.f32.mrb[3].mxu0  ;;  %v779_v13 = vpop.f32.mrb[2].mxu1 }
 0x289   :  { %v781_v52 = vpop.f32.mrb[3].mxu1  ;;  %927 = vmatprep.mubr.f32.mxu0 %v704_v26 }
 0x28a   :  { %928 = vmatmul.mubr.f32.vlgmr.msra.gmra.mrb[6].mxu0 %v702_v50  ;;  %1002 = vmatprep.mubr.f32.mxu1 %v781_v52 }
 0x28b   :  { %v708_v33 = vpop.f32.mrb[4].mxu0  ;;  %1003 = vmatmul.mubr.f32.vlgmr.msra.gmra.mrb[6].mxu1 %v779_v13 }
 0x28c   :  { %v710_v41 = vpop.f32.mrb[5].mxu0  ;;  %v785_v60 = vpop.f32.mrb[4].mxu1 }
 0x28d   :  { %v787_v42 = vpop.f32.mrb[5].mxu1  ;;  %932 = vmatprep.mubr.f32.mxu0 %v710_v41 }
 0x28e   :  { %933 = vmatmul.mubr.f32.gmra.mrb[8].mxu0 %v708_v33  ;;  %1007 = vmatprep.mubr.f32.mxu1 %v787_v42 }
 0x28f   :  { %1008 = vmatmul.mubr.f32.gmra.mrb[8].mxu1 %v785_v60  ;;  %1363 = vmatprep.mubr.msk.f32.mxu0 %vm1035_vm11, %v17_v8 }
 0x290   :  { %1374 = vmatprep.mubr.msk.f32.mxu1 %vm1139_vm12, %v19_v23 }
 0x35d   :  { %v1305_v44 = vpop.f32.mrb[6].mxu0 }
 0x35e   :  { %v1306_v45 = vpop.f32.mrb[7].mxu0  ;;  %v1343_v11 = vpop.f32.mrb[6].mxu1 }
 0x35f   :  { %v1307_v47 = vadd.f32 %v1306_v45, %v1305_v44  ;;  %v1344_v17 = vpop.f32.mrb[7].mxu1 }
 0x360   :  { %v1345_v46 = vadd.f32 %v1344_v17, %v1343_v11 }
 0x361   :  { %v930_v48 = vadd.f32 %v1307_v47, %v856_v16  ;;  %v1308_v49 = vpop.f32.mrb[8].mxu0 }
 0x362   :  { %v1309_v53 = vpop.f32.mrb[9].mxu0  ;;  %v1346_v19 = vpop.f32.mrb[8].mxu1 }
 0x363   :  { %v1005_v54 = vadd.f32 %v1345_v46, %v930_v48  ;;  %v1310_v18 = vadd.f32 %v1309_v53, %v1308_v49  ;;  %v1347_v20 = vpop.f32.mrb[9].mxu1 }
 0x364   :  { %v1348_v7 = vadd.f32 %v1347_v20, %v1346_v19 }
 0x365   :  { %v1263_v1 = vmul.f32 -1.442695, %v1005_v54  ;;  %v935_v57 = vadd.f32 %v1310_v18, %v861_v51 }
 0x367   :  { %1536 = vpow2.f32 %v1263_v1  ;;  %v1010_v59 = vadd.f32 %v1348_v7, %v935_v57 }
 0x369   :  { %v1264_v61 = vmul.f32 -1.442695, %v1010_v59 }
 0x36b   :  { %1538 = vpow2.f32 %v1264_v61 }
 0x371   :  { %v1537_v62 = vpop.eup %1536 }
 0x372   :  { %v1019_v0 = vadd.f32 1.0, %v1537_v62 }
 0x374   :  { %1540 = vrcp.f32 %v1019_v0 }
 0x375   :  { %v1539_v12 = vpop.eup %1538 }
 0x376   :  { %v1020_v6 = vadd.f32 1.0, %v1539_v12 }
 0x378   :  { %1542 = vrcp.f32 %v1020_v6 }
 0x37e   :  { %v1541_v15 = vpop.eup %1540 }
 0x37f   :  { %v1025_v63 = vmul.f32 %v1541_v15, %v1005_v54 }
 0x382   :  { %v1543_v22 = vpop.eup %1542 }
 0x383   :  { %v1026_v2 = vmul.f32 %v1543_v22, %v1010_v59 }
 0x385   :  { %v1489_v4 = vpack.c.bf16 %v1026_v2, %v1025_v63 }
 0x387   :  { %1490 = vmatprep.subr.bf16.mxu0 %v1489_v4 }
 0x388   :  { %1492 = vmatpush3.bf16.msra.mxu0 %v1489_v4 }
 0x38b   :  { %1364 = vmatmul.mubr.msk.f32.vlgmr.msra.gmra.mrb[10].mxu0 %vm1035_vm11, %v18_v9 }
 0x45e   :  { %v1365_v14 = vpop.f32.mrb[10].mxu0 }
 0x45f   :  { %v1114_v25 = vadd.f32 %v1365_v14, %v1033_v24  ;;  %v1108_v21 = vpop.f32.mrb[11].mxu0 }
 0x460   :  { %v1109_v29 = vadd.f32 %v1108_v21, %v1029_v56 }
 0x461   :  { %v1268_v58 = vmul.f32 -1.442695, %v1114_v25 }
 0x462   :  { %v1267_v30 = vmul.f32 -1.442695, %v1109_v29 }
 0x463   :  { %1544 = vpow2.f32 %v1268_v58 }
 0x464   :  { %1546 = vpow2.f32 %v1267_v30 }
 0x46d   :  { %v1545_v31 = vpop.eup %1544 }
 0x46e   :  { %v1547_v32 = vpop.eup %1546  ;;  %v1124_v35 = vadd.f32 1.0, %v1545_v31 }
 0x46f   :  { %v1123_v36 = vadd.f32 1.0, %v1547_v32 }
 0x470   :  { %1548 = vrcp.f32 %v1124_v35 }
 0x471   :  { %1550 = vrcp.f32 %v1123_v36 }
 0x47a   :  { %v1549_v37 = vpop.eup %1548 }
 0x47b   :  { %v1551_v39 = vpop.eup %1550  ;;  %v1130_v5 = vmul.f32 %v1549_v37, %v1114_v25 }
 0x47c   :  { %v1129_v28 = vmul.f32 %v1551_v39, %v1109_v29 }
 0x47e   :  { %v1493_v3 = vpack.c.bf16 %v1130_v5, %v1129_v28 }
 0x480   :  { %1494 = vmatprep.subr.bf16.mxu1 %v1493_v3 }
 0x481   :  { %1496 = vmatpush3.bf16.msra.mxu1 %v1493_v3 }
 0x482   :  { %1498 = vmatprep.subr.bf16.mxu1 %v1489_v4 }
 0x485   :  { %1500 = vmatpush3.bf16.msra.mxu1 %v1489_v4 }
 0x488   :  { %1375 = vmatmul.mubr.msk.f32.vlgmr.msra.gmra.mrb[10].mxu1 %vm1139_vm12, %v20_v40 }
 0x55b   :  { %v1376_v34 = vpop.f32.mrb[10].mxu1 }
 0x55c   :  { %v1218_v38 = vadd.f32 %v1376_v34, %v1137_v10  ;;  %v1212_v50 = vpop.f32.mrb[11].mxu1 }
 0x55d   :  { %v1213_v26 = vadd.f32 %v1212_v50, %v1133_v27 }
 0x55e   :  { %v1272_v13 = vmul.f32 -1.442695, %v1218_v38 }
 0x55f   :  { %v1271_v52 = vmul.f32 -1.442695, %v1213_v26 }
 0x560   :  { %1552 = vpow2.f32 %v1272_v13 }
 0x561   :  { %1554 = vpow2.f32 %v1271_v52 }
 0x56a   :  { %v1553_v33 = vpop.eup %1552 }
 0x56b   :  { %v1555_v41 = vpop.eup %1554  ;;  %v1228_v60 = vadd.f32 1.0, %v1553_v33 }
 0x56c   :  { %v1227_v42 = vadd.f32 1.0, %v1555_v41 }
 0x56d   :  { %1556 = vrcp.f32 %v1228_v60 }
 0x56e   :  { %1558 = vrcp.f32 %v1227_v42 }
 0x577   :  { %v1557_v8 = vpop.eup %1556 }
 0x578   :  { %v1559_v43 = vpop.eup %1558  ;;  %v1234_v44 = vmul.f32 %v1557_v8, %v1218_v38 }
 0x579   :  { %v1233_v16 = vmul.f32 %v1559_v43, %v1213_v26 }
 0x57a   :  { %1236 = vst [vmem:[%s2170_s3 + $0x8] sm:$0xff] %v1234_v44 }
 0x57b   :  { %1235 = vst [vmem:[%s2170_s3] sm:$0xff] %v1233_v16 }

</bundles_post_ra>
